<compile_context>
chip_gen: v6e
topology: v6e:2x2x1
jax: 0.10.0
libtpu: 0.0.40
codegen_flags: <defaults>
</compile_context>

<pallas_src>
import numpy as np
import jax
import jax.numpy as jnp
from jax.experimental import pallas as pl
from jax.experimental.pallas import tpu as pltpu

NUM_CLASSES = 5


def _tpu_topology():
    """(tensorcores_per_chip, scoped-VMEM cap in bytes) from the attached device."""
    kind = ""
    try:
        kind = (jax.devices()[0].device_kind or "").lower()
    except Exception:
        pass
    is_v7 = ("v7" in kind) or ("7x" in kind)
    # v7x: 2 TensorCores/chip and only 64 MiB VMEM/TC -> keep the scoped limit
    # well below physical; v5e/v6e have 128 MiB and a single TC.
    return (2, 48 << 20) if is_v7 else (1, 100 << 20)


def _recip(x, approx):
    # approx=True lowers to the EUP slot and co-issues with VPU/MXU work.
    return pl.reciprocal(x, approx=True) if approx else 1.0 / x


def _attn_class_mean_kernel(inv_temp, tb, tq, c, mxu_dtype, approx_recip):
    """Attention over KV chunks (online softmax) + class-mean accumulation."""

    def kernel(y_ref, q_ref, k_ref, v_ref, agg_ref, m_sc, l_sc, acc_sc, cnt_sc):
        i = pl.program_id(1)                  # q-row tile index
        j = pl.program_id(2)                  # kv-chunk index (reduction, innermost)
        last_i = pl.num_programs(1) - 1
        last_j = pl.num_programs(2) - 1

        @pl.when((i == 0) & (j == 0))
        def _init_batch_block():
            agg_ref[...] = jnp.zeros_like(agg_ref)
            cnt_sc[...] = jnp.zeros_like(cnt_sc)

        @pl.when(j == 0)
        def _init_q_tile():
            m_sc[...] = jnp.full_like(m_sc, -jnp.inf)
            l_sc[...] = jnp.zeros_like(l_sc)
            acc_sc[...] = jnp.zeros_like(acc_sc)

        # Temperature folded into q: TQ*D multiplies instead of TQ*N divides.
        q = q_ref[...].astype(jnp.float32) * inv_temp            # (tb, tq, D)
        k = k_ref[...]                                           # (tb, tk, D)
        if mxu_dtype is not None:
            q = q.astype(mxu_dtype)
            if k.dtype != mxu_dtype:
                k = k.astype(mxu_dtype)

        # Transpose-free contraction on the shared last dim (MXU-native form).
        s = jnp.einsum("btd,bnd->btn", q, k,
                       preferred_element_type=jnp.float32)       # (tb, tq, tk)

        # Online softmax; math stays in f32 (VPU/EUP).
        m_new = jnp.maximum(m_sc[...], jnp.max(s, axis=-1, keepdims=True))
        alpha = jnp.exp(m_sc[...] - m_new)                       # (tb, tq, 1)
        p = jnp.exp(s - m_new)                                   # (tb, tq, tk)
        l_sc[...] = alpha * l_sc[...] + jnp.sum(p, axis=-1, keepdims=True)

        v = v_ref[...]                                           # (tb, tk, Dv)
        if mxu_dtype is not None:
            p_mm = p.astype(mxu_dtype)
            if v.dtype != mxu_dtype:
                v = v.astype(mxu_dtype)
        else:
            p_mm = p
        acc_sc[...] = alpha * acc_sc[...] + jnp.einsum(
            "btn,bnd->btd", p_mm, v, preferred_element_type=jnp.float32)
        m_sc[...] = m_new

        @pl.when(j == last_j)
        def _finish_q_tile():
            # Normalize after p@v: TQ*Dv multiplies instead of TQ*N.
            o = acc_sc[...] * _recip(l_sc[...], approx_recip)    # (tb, tq, Dv) f32

            # Lane-dense transposed one-hot (tb, C, tq), built directly.
            y = y_ref[...].reshape(tb, 1, tq)                    # int32
            classes = jax.lax.broadcasted_iota(jnp.int32, (tb, c, tq), 1)
            yoh_t = (y == classes).astype(jnp.float32)           # (tb, C, tq)

            # TODO(synk): if p@v ever becomes the binding MXU matmul (large N,
            # Dv >= 64), fold yoh_t through p before the v matmul instead
            # (C*N*Dv flops vs TQ*N*Dv); at D=Dv=32 the kernel is not MXU-bound.
            agg_ref[...] += jnp.einsum("bct,btd->bcd", yoh_t, o,
                                       preferred_element_type=jnp.float32)
            cnt_sc[...] += jnp.sum(yoh_t, axis=-1, keepdims=True)

        @pl.when((i == last_i) & (j == last_j))
        def _finish_batch_block():
            # Per-class mean.  A class absent from a batch element yields NaN,
            # matching the PyTorch module.
            agg_ref[...] = agg_ref[...] * _recip(cnt_sc[...], approx_recip)

    return kernel


def scaled_dot_product_attention_iam(q, k, v, y, temperature, *,
                                     block_q=None, block_k=None, block_b=None,
                                     mxu_dtype=jnp.bfloat16):
    """q, k: (B, N, D); v: (B, N, Dv); y: (B, N) int labels in [0, NUM_CLASSES).

    mxu_dtype: MXU operand dtype (softmax / accumulation stay in f32).  Pass
    None for an exact all-f32 path (slower: multi-pass f32 MXU matmuls).
    K/V may be passed in already cast to bf16 upstream to also halve their
    HBM->VMEM DMA bytes; the kernel only casts when needed.
    """
    B, N, D = q.shape
    Dv = v.shape[-1]
    C = NUM_CLASSES

    n_tc, vmem_cap = _tpu_topology()

    # Query-row tile.
    if block_q is None:
        block_q = N if N <= 128 else 128
    assert N % block_q == 0, "N must be a multiple of block_q"
    n_qt = N // block_q

    # KV chunk: bounds the live (TQ, TK) score slab and the resident K/V blocks
    # (required to scale on v7x's 64 MiB VMEM at large N).
    if block_k is None:
        block_k = N if N <= 512 else 512
    assert N % block_k == 0, "N must be a multiple of block_k"
    n_kt = N // block_k

    # Batch blocking amortizes the ~0.35us per-grid-step overhead at tiny N.
    if block_b is None:
        cap = max(1, 512 // block_q)          # fatter steps on single-TC chips
        if n_tc >= 2 and B >= 2:
            cap = min(cap, B // 2)            # keep grid[0] >= 2: both v7x TCs busy
        block_b = 1
        for d in range(1, B + 1):
            if B % d == 0 and d <= cap:
                block_b = d
    assert B % block_b == 0

    grid = (B // block_b, n_qt, n_kt)

    y_i32 = jnp.asarray(y).reshape(B, N).astype(jnp.int32)
    y_lane = y_i32.reshape(B, n_qt, 1, block_q)   # lane-dense, pre-tiled layout

    inv_temp = float(1.0 / temperature)
    low_precision = (mxu_dtype is not None
                     and jnp.dtype(mxu_dtype).itemsize < 4)
    approx_recip = low_precision      # EUP approx recip only off the exact path

    in_bytes = max(jnp.dtype(q.dtype).itemsize, jnp.dtype(k.dtype).itemsize,
                   jnp.dtype(v.dtype).itemsize)
    mxu_bytes = 2 if low_precision else 4
    # Explicit scoped-VMEM budget (defaults: 16 MiB v5e / 32 MiB v6e,v7x):
    # double-buffered blocks + f32 score/prob slabs + scratch, 2x headroom.
    blocks = 2 * (block_b * block_k * (D + Dv) * in_bytes      # K + V blocks
                  + block_b * block_q * D * in_bytes           # q block
                  + block_b * block_q * 4                      # y block
                  + block_b * C * Dv * 4)                      # agg output block
    slabs = block_b * block_q * block_k * (3 * 4 + mxu_bytes)  # s, p (+ MXU copy)
    scratch = block_b * (block_q * (Dv + 2) + C) * 4           # m, l, acc, cnt
    vmem_limit = int(min(max(2 * (blocks + slabs + scratch), 16 << 20), vmem_cap))

    agg = pl.pallas_call(
        _attn_class_mean_kernel(inv_temp, block_b, block_q, C,
                                mxu_dtype if low_precision else None,
                                approx_recip),
        out_shape=jax.ShapeDtypeStruct((B, C, Dv), jnp.float32),
        grid_spec=pltpu.PrefetchScalarGridSpec(
            num_scalar_prefetch=0,
            grid=grid,
            in_specs=[
                pl.BlockSpec((block_b, 1, 1, block_q), lambda b, i, j: (b, i, 0, 0)),
                pl.BlockSpec((block_b, block_q, D), lambda b, i, j: (b, i, 0)),
                pl.BlockSpec((block_b, block_k, D), lambda b, i, j: (b, j, 0)),
                pl.BlockSpec((block_b, block_k, Dv), lambda b, i, j: (b, j, 0)),
            ],
            out_specs=pl.BlockSpec((block_b, C, Dv), lambda b, i, j: (b, 0, 0)),
            scratch_shapes=[
                pltpu.VMEM((block_b, block_q, 1), jnp.float32),    # m (running max)
                pltpu.VMEM((block_b, block_q, 1), jnp.float32),    # l (running denom)
                pltpu.VMEM((block_b, block_q, Dv), jnp.float32),   # acc (running p@v)
                pltpu.VMEM((block_b, C, 1), jnp.float32),          # class counts
            ],
        ),
        compiler_params=pltpu.CompilerParams(
            dimension_semantics=("parallel", "arbitrary", "arbitrary"),
            vmem_limit_bytes=vmem_limit),
    )(y_lane, q, k, v)

    # Final O(B*N*Dv) class scatter stays in XLA (the review flagged the second
    # pallas_call as pure launch/masked-store overhead).  Using the one-hot
    # matmul (not a gather) preserves the module's absent-class semantics:
    # cnt=0 -> NaN class mean -> 0*NaN = NaN for every row of that batch element.
    yoh = jax.nn.one_hot(y_i32, C, dtype=jnp.float32)              # (B, N, C)
    out = jnp.einsum("bnc,bcd->bnd", yoh, agg)                     # (B, N, Dv)
    return out.astype(q.dtype)


# ---------------------------- reference & test -------------------------------
def _reference(q, k, v, y, temperature):
    attn = jnp.einsum("bnd,bmd->bnm", q, k) / temperature
    attn = jax.nn.softmax(attn, axis=2)
    yoh = jax.nn.one_hot(y, NUM_CLASSES, dtype=jnp.float32)        # (B, N, 5)
    agg = jnp.einsum("bnc,bnm->bcm", yoh, attn)                    # (B, 5, N)
    counts = jnp.sum(yoh, axis=1)[:, :, None]                      # (B, 5, 1)
    agg = agg / counts
    attn = jnp.einsum("bnc,bcm->bnm", yoh, agg)                    # (B, N, N)
    return jnp.einsum("bnm,bmd->bnd", attn, v)


def _make_labels(key, B, N):
    # Every class present per batch row so the class-count division is finite
    # (an absent class gives NaN rows — same as the PyTorch module).
    reps = -(-N // NUM_CLASSES)
    base = jnp.tile(jnp.arange(NUM_CLASSES, dtype=jnp.int32), (B, reps))[:, :N]
    perm = jax.random.permutation(key, N)
    return base[:, perm]


if __name__ == "__main__":
    # --- test 1: small shape, default bf16 MXU path (f32 softmax/accumulate) --
    B, N, D = 2, 8, 32
    temperature = float(np.sqrt(D))
    kq, kk, kv_, ky = jax.random.split(jax.random.PRNGKey(0), 4)
    q = jax.random.normal(kq, (B, N, D), dtype=jnp.float32)
    k = jax.random.normal(kk, (B, N, D), dtype=jnp.float32)
    v = jax.random.normal(kv_, (B, N, D), dtype=jnp.float32)
    y = _make_labels(ky, B, N)

    ref = _reference(q, k, v, y, temperature)
    out = jax.block_until_ready(
        scaled_dot_product_attention_iam(q, k, v, y, temperature))
    np.testing.assert_allclose(np.asarray(out), np.asarray(ref),
                               rtol=5e-2, atol=5e-2)

    # --- test 2: exact f32 path, tight tolerance ------------------------------
    out_f32 = jax.block_until_ready(
        scaled_dot_product_attention_iam(q, k, v, y, temperature, mxu_dtype=None))
    np.testing.assert_allclose(np.asarray(out_f32), np.asarray(ref),
                               rtol=2e-5, atol=2e-5)

    # --- test 3: batch blocking + q-row tiling + online-softmax KV chunks -----
    #             grid (2, 4, 2), exact f32 path
    B2, N2, D2 = 4, 256, 32
    temperature2 = float(np.sqrt(D2))
    kq2, kk2, kv2, ky2 = jax.random.split(jax.random.PRNGKey(1), 4)
    q2 = jax.random.normal(kq2, (B2, N2, D2), dtype=jnp.float32)
    k2 = jax.random.normal(kk2, (B2, N2, D2), dtype=jnp.float32)
    v2 = jax.random.normal(kv2, (B2, N2, D2), dtype=jnp.float32)
    y2 = _make_labels(ky2, B2, N2)
    ref2 = _reference(q2, k2, v2, y2, temperature2)
    out2 = jax.block_until_ready(
        scaled_dot_product_attention_iam(q2, k2, v2, y2, temperature2,
                                         block_q=64, block_k=128, block_b=2,
                                         mxu_dtype=None))
    np.testing.assert_allclose(np.asarray(out2), np.asarray(ref2),
                               rtol=1e-4, atol=1e-4)

    # --- test 4: same tiled shapes on the default bf16 path (loose tolerance) -
    out3 = jax.block_until_ready(
        scaled_dot_product_attention_iam(q2, k2, v2, y2, temperature2,
                                         block_q=64, block_k=128, block_b=2))
    np.testing.assert_allclose(np.asarray(out3), np.asarray(ref2),
                               rtol=5e-2, atol=5e-2)

    print("KERNEL_OK")
</pallas_src>

<mosaic_0001>
module attributes {stable_mosaic.version = 11 : i64} {
  func.func @kernel(%arg0: i32, %arg1: i32, %arg2: i32, %arg3: memref<2x1x1x8xi32, #tpu.memory_space<vmem>>, %arg4: memref<2x8x32xf32, #tpu.memory_space<vmem>>, %arg5: memref<2x8x32xf32, #tpu.memory_space<vmem>>, %arg6: memref<2x8x32xf32, #tpu.memory_space<vmem>>, %arg7: memref<2x5x32xf32, #tpu.memory_space<vmem>>, %arg8: memref<2x8x1xf32, #tpu.memory_space<vmem>>, %arg9: memref<2x8x1xf32, #tpu.memory_space<vmem>>, %arg10: memref<2x8x32xf32, #tpu.memory_space<vmem>>, %arg11: memref<2x5x1xf32, #tpu.memory_space<vmem>>) attributes {dimension_semantics = [#tpu.dimension_semantics<parallel>, #tpu.dimension_semantics<arbitrary>, #tpu.dimension_semantics<arbitrary>], iteration_bounds = array<i64: 1, 1, 1>, scalar_prefetch = 0 : i64, scratch_operands = 4 : i64, tpu.core_type = #tpu.core_type<tc>, window_params = [{transform_indices = @transform_0, window_bounds = array<i64: 2, 1, 1, 8>}, {transform_indices = @transform_1, window_bounds = array<i64: 2, 8, 32>}, {transform_indices = @transform_2, window_bounds = array<i64: 2, 8, 32>}, {transform_indices = @transform_3, window_bounds = array<i64: 2, 8, 32>}, {transform_indices = @transform_4, window_bounds = array<i64: 2, 5, 32>}]} {
    %c0_i32 = arith.constant 0 : i32
    %0 = arith.cmpi eq, %arg1, %c0_i32 : i32
    %c0_i32_0 = arith.constant 0 : i32
    %1 = arith.cmpi eq, %arg2, %c0_i32_0 : i32
    %2 = arith.andi %0, %1 : i1
    %3 = arith.extui %2 : i1 to i32
    %c0_i32_1 = arith.constant 0 : i32
    %4 = arith.cmpi ne, %3, %c0_i32_1 : i32
    scf.if %4 {
      %cst_42 = arith.constant 0.000000e+00 : f32
      %49 = vector.broadcast %cst_42 : f32 to vector<2x5x32xf32>
      %c0_43 = arith.constant 0 : index
      %c0_44 = arith.constant 0 : index
      %c0_45 = arith.constant 0 : index
      %50 = vector.load %arg7[%c0_43, %c0_44, %c0_45] : memref<2x5x32xf32, #tpu.memory_space<vmem>>, vector<2x5x32xf32>
      tpu.vector_store %arg7[%c0_43, %c0_44, %c0_45], %49 {strides = array<i32>} : memref<2x5x32xf32, #tpu.memory_space<vmem>>, vector<2x5x32xf32>,
      %cst_46 = arith.constant 0.000000e+00 : f32
      %51 = vector.broadcast %cst_46 : f32 to vector<2x5x1xf32>
      %c0_47 = arith.constant 0 : index
      %c0_48 = arith.constant 0 : index
      %c0_49 = arith.constant 0 : index
      %52 = vector.load %arg11[%c0_47, %c0_48, %c0_49] : memref<2x5x1xf32, #tpu.memory_space<vmem>>, vector<2x5x1xf32>
      tpu.vector_store %arg11[%c0_47, %c0_48, %c0_49], %51 {strides = array<i32>} : memref<2x5x1xf32, #tpu.memory_space<vmem>>, vector<2x5x1xf32>,
    } else {
    }
    %c0_i32_2 = arith.constant 0 : i32
    %5 = arith.cmpi eq, %arg2, %c0_i32_2 : i32
    %6 = arith.extui %5 : i1 to i32
    %c0_i32_3 = arith.constant 0 : i32
    %7 = arith.cmpi ne, %6, %c0_i32_3 : i32
    scf.if %7 {
      %cst_42 = arith.constant 0xFF800000 : f32
      %49 = vector.broadcast %cst_42 : f32 to vector<2x8x1xf32>
      %c0_43 = arith.constant 0 : index
      %c0_44 = arith.constant 0 : index
      %c0_45 = arith.constant 0 : index
      %50 = vector.load %arg8[%c0_43, %c0_44, %c0_45] : memref<2x8x1xf32, #tpu.memory_space<vmem>>, vector<2x8x1xf32>
      tpu.vector_store %arg8[%c0_43, %c0_44, %c0_45], %49 {strides = array<i32>} : memref<2x8x1xf32, #tpu.memory_space<vmem>>, vector<2x8x1xf32>,
      %cst_46 = arith.constant 0.000000e+00 : f32
      %51 = vector.broadcast %cst_46 : f32 to vector<2x8x1xf32>
      %c0_47 = arith.constant 0 : index
      %c0_48 = arith.constant 0 : index
      %c0_49 = arith.constant 0 : index
      %52 = vector.load %arg9[%c0_47, %c0_48, %c0_49] : memref<2x8x1xf32, #tpu.memory_space<vmem>>, vector<2x8x1xf32>
      tpu.vector_store %arg9[%c0_47, %c0_48, %c0_49], %51 {strides = array<i32>} : memref<2x8x1xf32, #tpu.memory_space<vmem>>, vector<2x8x1xf32>,
      %cst_50 = arith.constant 0.000000e+00 : f32
      %53 = vector.broadcast %cst_50 : f32 to vector<2x8x32xf32>
      %c0_51 = arith.constant 0 : index
      %c0_52 = arith.constant 0 : index
      %c0_53 = arith.constant 0 : index
      %54 = vector.load %arg10[%c0_51, %c0_52, %c0_53] : memref<2x8x32xf32, #tpu.memory_space<vmem>>, vector<2x8x32xf32>
      tpu.vector_store %arg10[%c0_51, %c0_52, %c0_53], %53 {strides = array<i32>} : memref<2x8x32xf32, #tpu.memory_space<vmem>>, vector<2x8x32xf32>,
    } else {
    }
    %c0 = arith.constant 0 : index
    %c0_4 = arith.constant 0 : index
    %c0_5 = arith.constant 0 : index
    %8 = vector.load %arg4[%c0, %c0_4, %c0_5] : memref<2x8x32xf32, #tpu.memory_space<vmem>>, vector<2x8x32xf32>
    %cst = arith.constant 0.176776692 : f32
    %9 = vector.broadcast %cst : f32 to vector<2x8x32xf32>
    %10 = arith.mulf %8, %9 : vector<2x8x32xf32>
    %c0_6 = arith.constant 0 : index
    %c0_7 = arith.constant 0 : index
    %c0_8 = arith.constant 0 : index
    %11 = vector.load %arg5[%c0_6, %c0_7, %c0_8] : memref<2x8x32xf32, #tpu.memory_space<vmem>>, vector<2x8x32xf32>
    %12 = arith.truncf %10 : vector<2x8x32xf32> to vector<2x8x32xbf16>
    %13 = arith.truncf %11 : vector<2x8x32xf32> to vector<2x8x32xbf16>
    "tpu.trace_start"() <{level = 10 : i32, message = "btd,bnd->btn"}> : () -> ()
    %cst_9 = arith.constant dense<0.000000e+00> : vector<2x8x8xf32>
    %14 = tpu.matmul %12, %13, %cst_9 {dimension_numbers = #tpu.dot_dimension_numbers<[2], [2], [1], [1], [0, 0, 0, 1, 1, 1], [0], [0]>} : vector<2x8x32xbf16>, vector<2x8x32xbf16>, vector<2x8x8xf32> -> vector<2x8x8xf32>
    "tpu.trace_stop"() : () -> ()
    %c0_10 = arith.constant 0 : index
    %c0_11 = arith.constant 0 : index
    %c0_12 = arith.constant 0 : index
    %15 = vector.load %arg8[%c0_10, %c0_11, %c0_12] : memref<2x8x1xf32, #tpu.memory_space<vmem>>, vector<2x8x1xf32>
    %cst_13 = arith.constant dense<0xFF800000> : vector<2x8xf32>
    %16 = vector.multi_reduction <maximumf>, %14, %cst_13 [2] : vector<2x8x8xf32> to vector<2x8xf32>
    %17 = vector.shape_cast %16 : vector<2x8xf32> to vector<2x8x1xf32>
    %18 = arith.maximumf %15, %17 : vector<2x8x1xf32>
    %c0_14 = arith.constant 0 : index
    %c0_15 = arith.constant 0 : index
    %c0_16 = arith.constant 0 : index
    %19 = vector.load %arg8[%c0_14, %c0_15, %c0_16] : memref<2x8x1xf32, #tpu.memory_space<vmem>>, vector<2x8x1xf32>
    %20 = arith.subf %19, %18 : vector<2x8x1xf32>
    %21 = math.exp %20 : vector<2x8x1xf32>
    %22 = vector.broadcast %18 : vector<2x8x1xf32> to vector<2x8x8xf32>
    %23 = arith.subf %14, %22 : vector<2x8x8xf32>
    %24 = math.exp %23 : vector<2x8x8xf32>
    %c0_17 = arith.constant 0 : index
    %c0_18 = arith.constant 0 : index
    %c0_19 = arith.constant 0 : index
    %25 = vector.load %arg9[%c0_17, %c0_18, %c0_19] : memref<2x8x1xf32, #tpu.memory_space<vmem>>, vector<2x8x1xf32>
    %26 = arith.mulf %21, %25 : vector<2x8x1xf32>
    %cst_20 = arith.constant dense<0.000000e+00> : vector<2x8xf32>
    %27 = vector.multi_reduction <add>, %24, %cst_20 [2] : vector<2x8x8xf32> to vector<2x8xf32>
    %28 = vector.shape_cast %27 : vector<2x8xf32> to vector<2x8x1xf32>
    %29 = arith.addf %26, %28 : vector<2x8x1xf32>
    %c0_21 = arith.constant 0 : index
    %c0_22 = arith.constant 0 : index
    %c0_23 = arith.constant 0 : index
    %30 = vector.load %arg9[%c0_21, %c0_22, %c0_23] : memref<2x8x1xf32, #tpu.memory_space<vmem>>, vector<2x8x1xf32>
    tpu.vector_store %arg9[%c0_21, %c0_22, %c0_23], %29 {strides = array<i32>} : memref<2x8x1xf32, #tpu.memory_space<vmem>>, vector<2x8x1xf32>,
    %c0_24 = arith.constant 0 : index
    %c0_25 = arith.constant 0 : index
    %c0_26 = arith.constant 0 : index
    %31 = vector.load %arg6[%c0_24, %c0_25, %c0_26] : memref<2x8x32xf32, #tpu.memory_space<vmem>>, vector<2x8x32xf32>
    %32 = arith.truncf %24 : vector<2x8x8xf32> to vector<2x8x8xbf16>
    %33 = arith.truncf %31 : vector<2x8x32xf32> to vector<2x8x32xbf16>
    %c0_27 = arith.constant 0 : index
    %c0_28 = arith.constant 0 : index
    %c0_29 = arith.constant 0 : index
    %34 = vector.load %arg10[%c0_27, %c0_28, %c0_29] : memref<2x8x32xf32, #tpu.memory_space<vmem>>, vector<2x8x32xf32>
    %35 = vector.broadcast %21 : vector<2x8x1xf32> to vector<2x8x32xf32>
    %36 = arith.mulf %35, %34 : vector<2x8x32xf32>
    "tpu.trace_start"() <{level = 10 : i32, message = "btn,bnd->btd"}> : () -> ()
    %cst_30 = arith.constant dense<0.000000e+00> : vector<2x8x32xf32>
    %37 = tpu.matmul %32, %33, %cst_30 {dimension_numbers = #tpu.dot_dimension_numbers<[2], [1], [1], [2], [0, 0, 0, 1, 1, 2], [0], [0]>} : vector<2x8x8xbf16>, vector<2x8x32xbf16>, vector<2x8x32xf32> -> vector<2x8x32xf32>
    "tpu.trace_stop"() : () -> ()
    %38 = arith.addf %36, %37 : vector<2x8x32xf32>
    %c0_31 = arith.constant 0 : index
    %c0_32 = arith.constant 0 : index
    %c0_33 = arith.constant 0 : index
    %39 = vector.load %arg10[%c0_31, %c0_32, %c0_33] : memref<2x8x32xf32, #tpu.memory_space<vmem>>, vector<2x8x32xf32>
    tpu.vector_store %arg10[%c0_31, %c0_32, %c0_33], %38 {strides = array<i32>} : memref<2x8x32xf32, #tpu.memory_space<vmem>>, vector<2x8x32xf32>,
    %c0_34 = arith.constant 0 : index
    %c0_35 = arith.constant 0 : index
    %c0_36 = arith.constant 0 : index
    %40 = vector.load %arg8[%c0_34, %c0_35, %c0_36] : memref<2x8x1xf32, #tpu.memory_space<vmem>>, vector<2x8x1xf32>
    tpu.vector_store %arg8[%c0_34, %c0_35, %c0_36], %18 {strides = array<i32>} : memref<2x8x1xf32, #tpu.memory_space<vmem>>, vector<2x8x1xf32>,
    %c0_i32_37 = arith.constant 0 : i32
    %41 = arith.cmpi eq, %arg2, %c0_i32_37 : i32
    %42 = arith.extui %41 : i1 to i32
    %c0_i32_38 = arith.constant 0 : i32
    %43 = arith.cmpi ne, %42, %c0_i32_38 : i32
    scf.if %43 {
      %c0_42 = arith.constant 0 : index
      %c0_43 = arith.constant 0 : index
      %c0_44 = arith.constant 0 : index
      %49 = vector.load %arg10[%c0_42, %c0_43, %c0_44] : memref<2x8x32xf32, #tpu.memory_space<vmem>>, vector<2x8x32xf32>
      %c0_45 = arith.constant 0 : index
      %c0_46 = arith.constant 0 : index
      %c0_47 = arith.constant 0 : index
      %50 = vector.load %arg9[%c0_45, %c0_46, %c0_47] : memref<2x8x1xf32, #tpu.memory_space<vmem>>, vector<2x8x1xf32>
      %51 = tpu.reciprocal %50 {approx = true} : vector<2x8x1xf32> -> vector<2x8x1xf32>
      %52 = vector.broadcast %51 : vector<2x8x1xf32> to vector<2x8x32xf32>
      %53 = arith.mulf %49, %52 : vector<2x8x32xf32>
      %c0_48 = arith.constant 0 : index
      %c0_49 = arith.constant 0 : index
      %c0_50 = arith.constant 0 : index
      %c0_51 = arith.constant 0 : index
      %54 = vector.load %arg3[%c0_48, %c0_49, %c0_50, %c0_51] : memref<2x1x1x8xi32, #tpu.memory_space<vmem>>, vector<2x1x1x8xi32>
      %55 = vector.shape_cast %54 : vector<2x1x1x8xi32> to vector<2x1x8xi32>
      %56 = tpu.iota {dimensions = array<i32: 1>} : vector<2x5x8xi32>
      %57 = vector.broadcast %55 : vector<2x1x8xi32> to vector<2x5x8xi32>
      %58 = arith.cmpi eq, %57, %56 : vector<2x5x8xi32>
      %59 = arith.extui %58 : vector<2x5x8xi1> to vector<2x5x8xi32>
      %60 = arith.sitofp %59 : vector<2x5x8xi32> to vector<2x5x8xf32>
      %c0_52 = arith.constant 0 : index
      %c0_53 = arith.constant 0 : index
      %c0_54 = arith.constant 0 : index
      %61 = vector.load %arg7[%c0_52, %c0_53, %c0_54] : memref<2x5x32xf32, #tpu.memory_space<vmem>>, vector<2x5x32xf32>
      "tpu.trace_start"() <{level = 10 : i32, message = "bct,btd->bcd"}> : () -> ()
      %cst_55 = arith.constant dense<0.000000e+00> : vector<2x5x32xf32>
      %62 = tpu.matmul %60, %53, %cst_55 {dimension_numbers = #tpu.dot_dimension_numbers<[2], [1], [1], [2], [0, 0, 0, 1, 1, 2], [0], [0]>} : vector<2x5x8xf32>, vector<2x8x32xf32>, vector<2x5x32xf32> -> vector<2x5x32xf32>
      "tpu.trace_stop"() : () -> ()
      %63 = arith.addf %61, %62 : vector<2x5x32xf32>
      %c0_56 = arith.constant 0 : index
      %c0_57 = arith.constant 0 : index
      %c0_58 = arith.constant 0 : index
      %64 = vector.load %arg7[%c0_56, %c0_57, %c0_58] : memref<2x5x32xf32, #tpu.memory_space<vmem>>, vector<2x5x32xf32>
      tpu.vector_store %arg7[%c0_56, %c0_57, %c0_58], %63 {strides = array<i32>} : memref<2x5x32xf32, #tpu.memory_space<vmem>>, vector<2x5x32xf32>,
      %c0_59 = arith.constant 0 : index
      %c0_60 = arith.constant 0 : index
      %c0_61 = arith.constant 0 : index
      %65 = vector.load %arg11[%c0_59, %c0_60, %c0_61] : memref<2x5x1xf32, #tpu.memory_space<vmem>>, vector<2x5x1xf32>
      %cst_62 = arith.constant dense<0.000000e+00> : vector<2x5xf32>
      %66 = vector.multi_reduction <add>, %60, %cst_62 [2] : vector<2x5x8xf32> to vector<2x5xf32>
      %67 = vector.shape_cast %66 : vector<2x5xf32> to vector<2x5x1xf32>
      %68 = arith.addf %65, %67 : vector<2x5x1xf32>
      %c0_63 = arith.constant 0 : index
      %c0_64 = arith.constant 0 : index
      %c0_65 = arith.constant 0 : index
      %69 = vector.load %arg11[%c0_63, %c0_64, %c0_65] : memref<2x5x1xf32, #tpu.memory_space<vmem>>, vector<2x5x1xf32>
      tpu.vector_store %arg11[%c0_63, %c0_64, %c0_65], %68 {strides = array<i32>} : memref<2x5x1xf32, #tpu.memory_space<vmem>>, vector<2x5x1xf32>,
    } else {
    }
    %c0_i32_39 = arith.constant 0 : i32
    %44 = arith.cmpi eq, %arg1, %c0_i32_39 : i32
    %c0_i32_40 = arith.constant 0 : i32
    %45 = arith.cmpi eq, %arg2, %c0_i32_40 : i32
    %46 = arith.andi %44, %45 : i1
    %47 = arith.extui %46 : i1 to i32
    %c0_i32_41 = arith.constant 0 : i32
    %48 = arith.cmpi ne, %47, %c0_i32_41 : i32
    scf.if %48 {
      %c0_42 = arith.constant 0 : index
      %c0_43 = arith.constant 0 : index
      %c0_44 = arith.constant 0 : index
      %49 = vector.load %arg7[%c0_42, %c0_43, %c0_44] : memref<2x5x32xf32, #tpu.memory_space<vmem>>, vector<2x5x32xf32>
      %c0_45 = arith.constant 0 : index
      %c0_46 = arith.constant 0 : index
      %c0_47 = arith.constant 0 : index
      %50 = vector.load %arg11[%c0_45, %c0_46, %c0_47] : memref<2x5x1xf32, #tpu.memory_space<vmem>>, vector<2x5x1xf32>
      %51 = tpu.reciprocal %50 {approx = true} : vector<2x5x1xf32> -> vector<2x5x1xf32>
      %52 = vector.broadcast %51 : vector<2x5x1xf32> to vector<2x5x32xf32>
      %53 = arith.mulf %49, %52 : vector<2x5x32xf32>
      %c0_48 = arith.constant 0 : index
      %c0_49 = arith.constant 0 : index
      %c0_50 = arith.constant 0 : index
      %54 = vector.load %arg7[%c0_48, %c0_49, %c0_50] : memref<2x5x32xf32, #tpu.memory_space<vmem>>, vector<2x5x32xf32>
      tpu.vector_store %arg7[%c0_48, %c0_49, %c0_50], %53 {strides = array<i32>} : memref<2x5x32xf32, #tpu.memory_space<vmem>>, vector<2x5x32xf32>,
    } else {
    }
    return
  }
  func.func @transform_0(%arg0: i32, %arg1: i32, %arg2: i32) -> (i32, i32, i32, i32) {
    %c0_i32 = arith.constant 0 : i32
    %c0_i32_0 = arith.constant 0 : i32
    %c0_i32_1 = arith.constant 0 : i32
    return %arg0, %arg1, %c0_i32, %c0_i32_0 : i32, i32, i32, i32
  }
  func.func @transform_1(%arg0: i32, %arg1: i32, %arg2: i32) -> (i32, i32, i32) {
    %c0_i32 = arith.constant 0 : i32
    %c0_i32_0 = arith.constant 0 : i32
    return %arg0, %arg1, %c0_i32 : i32, i32, i32
  }
  func.func @transform_2(%arg0: i32, %arg1: i32, %arg2: i32) -> (i32, i32, i32) {
    %c0_i32 = arith.constant 0 : i32
    %c0_i32_0 = arith.constant 0 : i32
    return %arg0, %arg2, %c0_i32 : i32, i32, i32
  }
  func.func @transform_3(%arg0: i32, %arg1: i32, %arg2: i32) -> (i32, i32, i32) {
    %c0_i32 = arith.constant 0 : i32
    %c0_i32_0 = arith.constant 0 : i32
    return %arg0, %arg2, %c0_i32 : i32, i32, i32
  }
  func.func @transform_4(%arg0: i32, %arg1: i32, %arg2: i32) -> (i32, i32, i32) {
    %c0_i32 = arith.constant 0 : i32
    %c0_i32_0 = arith.constant 0 : i32
    %c0_i32_1 = arith.constant 0 : i32
    return %arg0, %c0_i32, %c0_i32_0 : i32, i32, i32
  }
}

</mosaic_0001>

<bundles_post_ra>
// kernel: tpu_custom_call.1
= control target key start
LH: loop header
LB: loop body
LE: loop exit
PB: predicated region body
PF: predicated region fallthrough
CT: control target
= control target key end

     0   :  { %9 = vsyncpa [#allocation7], 0  ;;  %s930_s0 = inlined_call_operand.hbm [shape: s32[2,1,1,8], index: 0, kind: input, shape index: {}]   ;;  %s931_s1 = inlined_call_operand.hbm [shape: f32[2,8,32], index: 1, kind: input, shape index: {}]   ;;  %s932_s2 = inlined_call_operand.hbm [shape: f32[2,8,32], index: 2, kind: input, shape index: {}]   ;;  %s933_s3 = inlined_call_operand.hbm [shape: f32[2,8,32], index: 3, kind: input, shape index: {}]   ;;  %s934_s4 = inlined_call_operand.vmem [shape: f32[2,5,32], index: 4, kind: output, shape index: {}]  }
   0x1   :  { %10 = vsyncpa [#allocation9], 0 }
   0x2   :  { %11 = vsyncpa [#allocation12], 0  ;;  %s774_s15 = smov [#allocation8]  }
   0x3   :  { %s29_s16 = sshll.u32 %s774_s15, 4  ;;  %s30_s16 = int_to_ptr.vmem [resolvable:$true] %s29_s16 }
   0x4   :  { %s696_s17 = scalar_lea.vmem %s30_s16, 256  ;;  %p701_p1 = scmp.lt.s32.totalorder %s30_s16, %s30_s16 }
   0x5   :  { %p697_p0 = scmp.ne.s32.totalorder %s30_s16, %s696_s17  ;;  %p702_p2 = scmp.lt.s32.totalorder %s696_s17, %s696_s17 }
   0x7   :  { %p703_p3 = por %p702_p2, %p701_p1 }
   0x9   :  { %p704_p4 = pnand %p703_p3, %p697_p0 }
   0xb   :  { %707 = shalt.err (!%p704_p4)
}
   0xc   :  { %s775_s18 = smov 128   ;;  %s776_s19 = smov 8  }
   0xd   :  { %35 = dma.hbm_to_vmem [thread:$0]  %s931_s1, 256, %s30_s16, [#allocation9], %s775_s18, %s775_s18, %s776_s19  }
   0xe   :  { %s777_s22 = smov [#allocation6]  }
   0xf   :  { %s17_s23 = sshll.u32 %s777_s22, 4  ;;  %s18_s23 = int_to_ptr.vmem [resolvable:$true] %s17_s23 }
  0x10   :  { %s716_s24 = scalar_lea.vmem %s18_s23, 32  ;;  %p721_p6 = scmp.lt.s32.totalorder %s18_s23, %s18_s23 }
  0x11   :  { %p717_p5 = scmp.ne.s32.totalorder %s18_s23, %s716_s24  ;;  %p722_p7 = scmp.lt.s32.totalorder %s716_s24, %s716_s24 }
  0x13   :  { %p723_p8 = por %p722_p7, %p721_p6 }
  0x15   :  { %p724_p9 = pnand %p723_p8, %p717_p5 }
  0x17   :  { %727 = shalt.err (!%p724_p9)
}
  0x18   :  { %s778_s25 = smov 16   ;;  %s779_s26 = smov 1  }
  0x19   :  { %23 = dma.hbm_to_vmem [thread:$0]  %s930_s0, 32, %s18_s23, [#allocation7], %s778_s25, %s778_s25, %s779_s26  }
  0x1a   :  { %s780_s29 = smov [#allocation10]   ;;  %s781_s5 = smov [#allocation11]  }
  0x1b   :  { %s41_s30 = sshll.u32 %s780_s29, 4  ;;  %s53_s1 = sshll.u32 %s781_s5, 4  ;;  %s42_s30 = int_to_ptr.vmem [resolvable:$true] %s41_s30  ;;  %s54_s1 = int_to_ptr.vmem [resolvable:$true] %s53_s1 }
  0x1c   :  { %s736_s6 = scalar_lea.vmem %s42_s30, 256  ;;  %p741_p11 = scmp.lt.s32.totalorder %s42_s30, %s42_s30 }
  0x1d   :  { %p737_p10 = scmp.ne.s32.totalorder %s42_s30, %s736_s6  ;;  %p742_p12 = scmp.lt.s32.totalorder %s736_s6, %s736_s6 }
  0x1f   :  { %p743_p13 = por %p742_p12, %p741_p11 }
  0x21   :  { %p744_p0 = pnand %p743_p13, %p737_p10 }
  0x23   :  { %747 = shalt.err (!%p744_p0)
}
  0x24   :  { %47 = dma.hbm_to_vmem [thread:$0]  %s932_s2, 256, %s42_s30, [#allocation9], %s775_s18, %s775_s18, %s776_s19  }
  0x25   :  { %s756_s0 = scalar_lea.vmem %s54_s1, 256  ;;  %p761_p2 = scmp.lt.s32.totalorder %s54_s1, %s54_s1 }
  0x26   :  { %p757_p1 = scmp.ne.s32.totalorder %s54_s1, %s756_s0  ;;  %p762_p3 = scmp.lt.s32.totalorder %s756_s0, %s756_s0 }
  0x28   :  { %p763_p4 = por %p762_p3, %p761_p2 }
  0x2a   :  { %p764_p5 = pnand %p763_p4, %p757_p1 }
  0x2c   :  { %767 = shalt.err (!%p764_p5)
}
  0x2d   :  { %59 = dma.hbm_to_vmem [thread:$0]  %s933_s3, 256, %s54_s1, [#allocation12], %s775_s18, %s775_s18, %s776_s19  }
  0x2e   :  { %768 = dma.done.wait [#allocation7], 32  }
  0x2f   :  { %769 = vsyncadd [#allocation7], 4294967264 }
  0x30   :  { %770 = dma.done.wait [#allocation9], 512  }
  0x31   :  { %771 = vsyncadd [#allocation9], 4294966784 }
  0x32   :  { %772 = dma.done.wait [#allocation12], 256  }
  0x33   :  { %773 = vsyncadd [#allocation12], 4294967040  ;;  %vm93_vm0 = vcmask 261120   ;;  %v782_v0 = vmov 0.0   ;;  %vm783_vm1 = vmmov 0   ;;  %v100_v1 = vld [vmem:[#allocation10] sm:$0xff]  ;;  %v389_v55 = vlaneseq }
  0x34   :  { %624 = vmatprep.subr.bf16.mxu0 %v782_v0  ;;  %630 = vmatprep.subr.bf16.mxu1 %v782_v0  ;;  %94 = vst.msk [vmem:[#allocation4] sm:$0xff] %vm93_vm0, %v782_v0  ;;  %95 = vst.msk [vmem:[#allocation4 + $0x8] sm:$0xff] %vm93_vm0, %v782_v0  ;;  %v101_v2 = vld [vmem:[#allocation10 + $0x8] sm:$0xff]  ;;  %v96_v3 = vld [vmem:[#allocation8] sm:$0xff]  ;;  %v104_v4 = vpack.c.bf16 %v100_v1, %v100_v1  ;;  %vm88_vm2 = vcmask 7168   ;;  %v784_v13 = vmov -inf  }
  0x35   :  { %626 = vmatprep.mubr.msk.bf16.mxu0 %vm783_vm1, %v782_v0  ;;  %632 = vmatprep.mubr.msk.bf16.mxu1 %vm783_vm1, %v782_v0  ;;  %v105_v5 = vpack.c.bf16 %v101_v2, %v101_v2  ;;  %v97_v6 = vld [vmem:[#allocation8 + $0x8] sm:$0xff]  ;;  %v98_v9 = vmul.f32 0.17677669, %v96_v3  ;;  %89 = vst.msk [vmem:[#allocation2] sm:$0xff] %vm88_vm2, %v784_v13  ;;  %90 = vst.msk [vmem:[#allocation2 + $0x8] sm:$0xff] %vm88_vm2, %v784_v13  ;;  %vm201_vm3 = vcmask 64512  }
  0x36   :  { %v111_v7 = vsel %vm93_vm0, %v104_v4, 0  ;;  %v99_v10 = vmul.f32 0.17677669, %v97_v6  ;;  %91 = vst.msk [vmem:[#allocation3] sm:$0xff] %vm88_vm2, %v782_v0  ;;  %92 = vst.msk [vmem:[#allocation3 + $0x8] sm:$0xff] %vm88_vm2, %v782_v0  ;;  %v785_v24 = vmov 0  }
  0x37   :  { %v157_v8 = vsel %vm93_vm0, %v105_v5, 0  ;;  %625 = vmatpush3.bf16.xpose.msra.mxu0 %v111_v7  ;;  %v102_v11 = vpack.c.bf16 %v98_v9, %v98_v9  ;;  %670 = vset.pattern.permute.xlu1 %v785_v24  ;;  %v247_v33 = vld [vmem:[#allocation11] sm:$0xff]  ;;  %vm270_vm4 = vcmask 1043456   ;;  %v248_v36 = vld [vmem:[#allocation11 + $0x8] sm:$0xff]  ;;  %v390_v56 = vshrl.u32 %v389_v55, 7 }
  0x38   :  { %631 = vmatpush3.bf16.xpose.msra.mxu1 %v157_v8  ;;  %636 = vmatprep.subr.bf16.mxu0 %v782_v0  ;;  %v103_v12 = vpack.c.bf16 %v99_v10, %v99_v10  ;;  %v251_v34 = vpack.c.bf16 %v247_v33, %v247_v33  ;;  %v252_v37 = vpack.c.bf16 %v248_v36, %v248_v36  ;;  %v606_v57 = vld [vmem:[#allocation6] ss:$0 sm:$0xff]  ;;  %vm560_vm6 = vcmask 61440   ;;  %v607_v9 = vld [vmem:[#allocation6 + $0x1] ss:$0 sm:$0xff] }
  0x39   :  { %642 = vmatprep.subr.bf16.mxu1 %v782_v0  ;;  %671 = vset.pattern.permute.xlu0 %v785_v24  ;;  %vm399_vm5 = vcmp.eq.s32.totalorder %v606_v57, %v390_v56  ;;  %vm82_vm7 = vcmask 4096   ;;  %vm400_vm8 = vcmp.eq.s32.totalorder %v607_v9, %v390_v56  ;;  %vm79_vm9 = vcmask 258048  }
  0x3a   :  { %v272_v35 = vsel %vm270_vm4, %v251_v34, 0  ;;  %v318_v38 = vsel %vm270_vm4, %v252_v37, 0  ;;  %v873_v58 = vsel %vm399_vm5, 1.0, %v782_v0  ;;  %83 = vst.msk [vmem:[#allocation5] sm:$0x1f] %vm82_vm7, %v782_v0  ;;  %v609_v13 = vsel %vm400_vm8, 1.0, %v782_v0 }
  0x3b   :  { %v561_v59 = vsel %vm560_vm6, %v873_v58, 0.0  ;;  %84 = vst.msk [vmem:[#allocation5 + $0x8] sm:$0x1f] %vm82_vm7, %v782_v0  ;;  %v253_v10 = vld [vmem:[#allocation4] sm:$0xff] }
  0x3c   :  { %v199_v25 = vld [vmem:[#allocation2] sm:$0xff]  ;;  %v200_v28 = vld [vmem:[#allocation2 + $0x8] sm:$0xff]  ;;  %80 = vst.msk [vmem:[%s934_s4] sm:$0x1f] %vm79_vm9, %v782_v0  ;;  %81 = vst.msk [vmem:[%s934_s4 + $0x8] sm:$0x1f] %vm79_vm9, %v782_v0 }
  0x3d   :  { %v232_v60 = vld [vmem:[#allocation3] sm:$0xff]  ;;  %v233_v63 = vld [vmem:[#allocation3 + $0x8] sm:$0xff] }
  0x3e   :  { %627 = vmatmul.mubr.msk.bf16.vlgmr.msra.gmra.mxu0 %vm93_vm0, %v102_v11 }
  0x3f   :  { %633 = vmatmul.mubr.msk.bf16.vlgmr.msra.gmra.mxu1 %vm93_vm0, %v103_v12  ;;  %638 = vmatprep.mubr.msk.bf16.mxu0 %vm783_vm1, %v782_v0 }
  0x40   :  { %644 = vmatprep.mubr.msk.bf16.mxu1 %vm783_vm1, %v782_v0  ;;  %637 = vmatpush3.bf16.msra.mxu0 %v272_v35 }
  0x41   :  { %648 = vmatprep.subr.mxu0 %v782_v0  ;;  %643 = vmatpush3.bf16.msra.mxu1 %v318_v38 }
  0x42   :  { %653 = vmatprep.subr.mxu1 %v782_v0 }
  0xfe   :  { %v147_v14 = vpop.f32.mrf.mxu0 }
  0xff   :  { %v193_v15 = vpop.f32.mrf.mxu1  ;;  %v202_v16 = vsel %vm201_vm3, %v147_v14, -inf }
 0x100   :  { %203 = vmax.xlane.f32.xlu0 %v202_v16  ;;  %v628_v18 = vpop.f32.mrf.mxu0  ;;  %v205_v19 = vsel %vm201_vm3, %v193_v15, -inf  ;;  %v254_v16 = vld [vmem:[#allocation4 + $0x8] sm:$0xff] }
 0x101   :  { %v634_v17 = vpop.f32.mrf.mxu1 }
 0x102   :  { %v150_v20 = vpop.f32.mrf.mxu0 }
 0x103   :  { %v196_v21 = vpop.f32.mrf.mxu1  ;;  %v564_v20 = vsel %vm560_vm6, %v609_v13, 0.0 }
 0x104   :  { %206 = vmax.xlane.f32.xlu0 %v205_v19  ;;  %v629_v23 = vpop.f32.mrf.mxu0 }
 0x105   :  { %v635_v22 = vpop.f32.mrf.mxu1 }
 0x189   :  { %v204_v26 = vpop.xlane.xlu0 %203 }
 0x18a   :  { %v208_v27 = vmax.f32 %v199_v25, %v204_v26 }
 0x18c   :  { %v210_v29 = vsub.f32 %v199_v25, %v208_v27  ;;  %364 = vst.msk [vmem:[#allocation2] sm:$0xff] %vm88_vm2, %v208_v27  ;;  %218 = vperm.xlu1 %670, %v208_v27  }
 0x18d   :  { %v207_v30 = vpop.xlane.xlu0 %206 }
 0x18e   :  { %v209_v31 = vmax.f32 %v200_v28, %v207_v30  ;;  %v212_v52 = vmul.f32 1.442695, %v210_v29 }
 0x190   :  { %v211_v32 = vsub.f32 %v200_v28, %v209_v31  ;;  %365 = vst.msk [vmem:[#allocation2 + $0x8] sm:$0xff] %vm88_vm2, %v209_v31  ;;  %223 = vperm.xlu1 %670, %v209_v31  }
 0x192   :  { %v214_v49 = vmul.f32 1.442695, %v211_v32 }
 0x207   :  { %v219_v39 = vpop.permute.xlu1 %218 }
 0x208   :  { %v226_v40 = vsub.f32 %v147_v14, %v219_v39  ;;  %v559_v39 = vld [vmem:[#allocation5 + $0x8] sm:$0x1f] }
 0x20a   :  { %v228_v41 = vmul.f32 1.442695, %v226_v40 }
 0x20b   :  { %v224_v42 = vpop.permute.xlu1 %223 }
 0x20c   :  { %672 = vpow2.f32 %v228_v41  ;;  %v227_v43 = vsub.f32 %v193_v15, %v224_v42  ;;  %v558_v15 = vld [vmem:[#allocation5] sm:$0x1f] }
 0x20e   :  { %v230_v44 = vmul.f32 1.442695, %v227_v43  ;;  %v405_v43 = vld [vmem:[%s934_s4] sm:$0x1f] }
 0x210   :  { %674 = vpow2.f32 %v230_v44 }
 0x211   :  { %676 = vpow2.f32 %v214_v49 }
 0x212   :  { %678 = vpow2.f32 %v212_v52 }
 0x219   :  { %v673_v45 = vpop.eup %672 }
 0x21a   :  { %v236_v46 = vsel %vm201_vm3, %v673_v45, 0.0  ;;  %v249_v47 = vpack.c.bf16 %v673_v45, %v673_v45 }
 0x21b   :  { %237 = vadd.xlane.f32.xlu0 %v236_v46  ;;  %v406_v46 = vld [vmem:[%s934_s4 + $0x8] sm:$0x1f] }
 0x21c   :  { %639 = vmatmul.mubr.msk.bf16.vlgmr.msra.gmra.mxu0 %vm201_vm3, %v249_v47 }
 0x21d   :  { %v675_v48 = vpop.eup %674  ;;  %650 = vmatprep.mubr.msk.f32.mxu0 %vm783_vm1, %v782_v0 }
 0x21e   :  { %v239_v50 = vsel %vm201_vm3, %v675_v48, 0.0  ;;  %v250_v51 = vpack.c.bf16 %v675_v48, %v675_v48  ;;  %v677_v53 = vpop.eup %676 }
 0x21f   :  { %240 = vadd.xlane.f32.xlu1 %v239_v50  ;;  %v679_v54 = vpop.eup %678  ;;  %v235_v2 = vmul.f32 %v677_v53, %v233_v63 }
 0x220   :  { %645 = vmatmul.mubr.msk.bf16.vlgmr.msra.gmra.mxu1 %vm201_vm3, %v250_v51  ;;  %v234_v61 = vmul.f32 %v679_v54, %v232_v60 }
 0x221   :  { %655 = vmatprep.mubr.msk.f32.mxu1 %vm783_vm1, %v782_v0 }
 0x230   :  { %262 = vperm.xlu1 %670, %v677_v53  }
 0x231   :  { %257 = vperm.xlu0 %671, %v679_v54  }
 0x254   :  { %562 = vadd.xlane.f32.xlu1 %v561_v59 }
 0x2a4   :  { %v238_v62 = vpop.xlane.xlu0 %237 }
 0x2a5   :  { %v242_v1 = vadd.f32 %v238_v62, %v234_v61 }
 0x2a7   :  { %245 = vst.msk [vmem:[#allocation3] sm:$0xff] %vm88_vm2, %v242_v1 }
 0x2a8   :  { %v241_v3 = vpop.xlane.xlu1 %240 }
 0x2a9   :  { %v243_v4 = vadd.f32 %v241_v3, %v235_v2 }
 0x2ab   :  { %246 = vst.msk [vmem:[#allocation3 + $0x8] sm:$0xff] %vm88_vm2, %v243_v4 }
 0x2ac   :  { %v258_v11 = vpop.permute.xlu0 %257  ;;  %v263_v12 = vpop.permute.xlu1 %262 }
 0x2ad   :  { %v265_v14 = vmul.f32 %v258_v11, %v253_v10  ;;  %v266_v23 = vmul.f32 %v263_v12, %v254_v16 }
 0x2ae   :  { %v371_v5 = vld [vmem:[#allocation3] sm:$0xff] }
 0x2af   :  { %680 = vrcp.f32 %v371_v5 }
 0x2b2   :  { %v372_v6 = vld [vmem:[#allocation3 + $0x8] sm:$0xff] }
 0x2b3   :  { %682 = vrcp.f32 %v372_v6 }
 0x2bc   :  { %v681_v7 = vpop.eup %680 }
 0x2bd   :  { %377 = vperm.xlu0 %671, %v681_v7  }
 0x2c0   :  { %v683_v8 = vpop.eup %682 }
 0x2c1   :  { %382 = vperm.xlu0 %671, %v683_v8  }
 0x2dc   :  { %v308_v17 = vpop.f32.mrf.mxu0 }
 0x2dd   :  { %v360_v18 = vadd.f32 %v308_v17, %v265_v14  ;;  %v563_v19 = vpop.xlane.xlu1 %562 }
 0x2de   :  { %v567_v21 = vadd.f32 %v563_v19, %v558_v15  ;;  %v640_v22 = vpop.f32.mrf.mxu0 }
 0x2df   :  { %362 = vst.msk [vmem:[#allocation4] sm:$0xff] %vm93_vm0, %v360_v18 }
 0x2e0   :  { %570 = vst.msk [vmem:[#allocation5] sm:$0x1f] %vm82_vm7, %v567_v21  ;;  %v311_v24 = vpop.f32.mrf.mxu0  ;;  %v354_v25 = vpop.f32.mrf.mxu1  ;;  %565 = vadd.xlane.f32.xlu0 %v564_v20 }
 0x2e1   :  { %v361_v26 = vadd.f32 %v354_v25, %v266_v23 }
 0x2e2   :  { %v641_v27 = vpop.f32.mrf.mxu0  ;;  %v646_v28 = vpop.f32.mrf.mxu1 }
 0x2e3   :  { %363 = vst.msk [vmem:[#allocation4 + $0x8] sm:$0xff] %vm93_vm0, %v361_v26 }
 0x2e4   :  { %v357_v29 = vpop.f32.mrf.mxu1 }
 0x2e6   :  { %v647_v30 = vpop.f32.mrf.mxu1  ;;  %v369_v33 = vld [vmem:[#allocation4] sm:$0xff] }
 0x2e7   :  { %v576_v31 = vld [vmem:[#allocation5] sm:$0x1f] }
 0x2e8   :  { %684 = vrcp.f32 %v576_v31 }
 0x2ea   :  { %v370_v36 = vld [vmem:[#allocation4 + $0x8] sm:$0xff] }
 0x2f5   :  { %v685_v32 = vpop.eup %684 }
 0x2f6   :  { %582 = vperm.xlu0 %671, %v685_v32  }
 0x338   :  { %v378_v34 = vpop.permute.xlu0 %377 }
 0x339   :  { %v385_v35 = vmul.f32 %v378_v34, %v369_v33 }
 0x33b   :  { %649 = vmatpush3.msra.mxu0 %v385_v35 }
 0x33c   :  { %651 = vmatmul.mubr.msk.f32.vlgmr.msra.gmra.mxu0 %vm201_vm3, %v873_v58  ;;  %v383_v37 = vpop.permute.xlu0 %382 }
 0x33d   :  { %v386_v38 = vmul.f32 %v383_v37, %v370_v36 }
 0x33f   :  { %654 = vmatpush3.msra.mxu1 %v386_v38 }
 0x340   :  { %656 = vmatmul.mubr.msk.f32.vlgmr.msra.gmra.mxu1 %vm201_vm3, %v609_v13 }
 0x369   :  { %v566_v40 = vpop.xlane.xlu0 %565 }
 0x36a   :  { %v568_v41 = vadd.f32 %v566_v40, %v559_v39 }
 0x36c   :  { %571 = vst.msk [vmem:[#allocation5 + $0x8] sm:$0x1f] %vm82_vm7, %v568_v41 }
 0x371   :  { %v583_v51 = vpop.permute.xlu0 %582 }
 0x373   :  { %v577_v42 = vld [vmem:[#allocation5 + $0x8] sm:$0x1f] }
 0x374   :  { %686 = vrcp.f32 %v577_v42 }
 0x381   :  { %v687_v0 = vpop.eup %686 }
 0x382   :  { %587 = vperm.xlu1 %670, %v687_v0  }
 0x3fc   :  { %v476_v44 = vpop.f32.mrf.mxu0 }
 0x3fd   :  { %v553_v45 = vadd.f32 %v476_v44, %v405_v43  ;;  %v588_v54 = vpop.permute.xlu1 %587 }
 0x3fe   :  { %v652_v47 = vpop.f32.mrf.mxu0 }
 0x3ff   :  { %556 = vst.msk [vmem:[%s934_s4] sm:$0x1f] %vm79_vm9, %v553_v45 }
 0x400   :  { %v549_v48 = vpop.f32.mrf.mxu1 }
 0x401   :  { %v554_v49 = vadd.f32 %v549_v48, %v406_v46 }
 0x402   :  { %v657_v50 = vpop.f32.mrf.mxu1 }
 0x403   :  { %557 = vst.msk [vmem:[%s934_s4 + $0x8] sm:$0x1f] %vm79_vm9, %v554_v49 }
 0x406   :  { %v574_v52 = vld [vmem:[%s934_s4] sm:$0x1f] }
 0x407   :  { %v590_v53 = vmul.f32 %v583_v51, %v574_v52 }
 0x409   :  { %593 = vst.msk [vmem:[%s934_s4] sm:$0x1f] %vm79_vm9, %v590_v53 }
 0x40a   :  { %v575_v55 = vld [vmem:[%s934_s4 + $0x8] sm:$0x1f] }
 0x40b   :  { %v591_v56 = vmul.f32 %v588_v54, %v575_v55 }
 0x40d   :  { %594 = vst.msk [vmem:[%s934_s4 + $0x8] sm:$0x1f] %vm79_vm9, %v591_v56 }
 0x40e   :  { %599 = vsyncpa [#allocation7], 1 }
 0x40f   :  { %600 = vsyncpa [#allocation9], 1 }
 0x410   :  { %601 = vsyncpa [#allocation12], 1 }

</bundles_post_ra>
